<compile_context>
chip_gen: v5e
topology: v5e:2x2
jax: 0.10.0
libtpu: 0.0.40
codegen_flags: <defaults>
</compile_context>

<pallas_src>
import jax
import jax.numpy as jnp
from jax.experimental import pallas as pl
from jax.experimental.pallas import tpu as pltpu


def _identity_copy_kernel(x_ref, o_ref):
    # ConvNet.forward(x) == x : pure pass-through of the current tile.
    o_ref[...] = x_ref[...]


def _choose_layout(n_elems, itemsize):
    """Pick a lane-dense (rows, cols) view of the flat array plus a row tile.

    Returns (rows, cols, tile_rows) with rows * cols == n_elems, or None when
    no lane-dense factorization exists (size not divisible by 128).
    """
    # Sublane packing grain: 8 rows (f32/i32), 16 (bf16/f16), 32 (int8/fp8).
    sub_mult = max(8, 32 // itemsize)

    # Prefer the widest lane count that still keeps >= sub_mult rows, so the
    # vst path is full-width AND sublanes are fully utilized (no (1, N) slab).
    cols = None
    for c in (8192, 4096, 2048, 1024, 512, 256, 128):
        if n_elems % c == 0 and n_elems // c >= sub_mult:
            cols = c
            break
    if cols is None:
        return None
    rows = n_elems // cols

    # ~4 MiB per tile: near the HBM-roofline plateau on v6e/v7x; 2 in + 2 out
    # double-buffered tiles (16 MiB total) stay inside the explicit 32 MiB
    # vmem_limit_bytes requested below (safe on v5e/v6e/v7x alike).
    tile_bytes = 4 * 1024 * 1024
    tile_rows = max(sub_mult,
                    (tile_bytes // (cols * itemsize)) // sub_mult * sub_mult)

    if rows <= tile_rows:
        if rows >= 2 * sub_mult:
            # Split into >= 2 grid steps so the "parallel" axis can shard
            # across v7x's two TensorCores instead of leaving one idle.
            tile_rows = max(sub_mult, (rows // 2) // sub_mult * sub_mult)
        else:
            # Tiny input: single block equal to the full array extent.
            tile_rows = rows
    return rows, cols, tile_rows


def convnet_forward(x):
    """ConvNet.forward is an identity: the fastest implementation is no kernel."""
    return x


def convnet_forward_pallas(x):
    """Explicit Pallas pass-through copy of x (materializes a fresh output)."""
    orig_shape = x.shape
    dtype = x.dtype
    itemsize = jnp.dtype(dtype).itemsize

    n_elems = 1
    for d in orig_shape:
        n_elems *= d

    layout = _choose_layout(n_elems, itemsize)

    if layout is None:
        # Ragged size (not a multiple of 128): one whole-array block, no
        # padding / slicing passes.  Block shape == full array dims, so the
        # (8, 128) constraint does not apply.
        # TODO(synk): a ragged input larger than VMEM would need a chunked
        # HBM->HBM DMA path instead of a single whole-array block.
        return pl.pallas_call(
            _identity_copy_kernel,
            out_shape=jax.ShapeDtypeStruct(orig_shape, dtype),
            compiler_params=pltpu.CompilerParams(
                vmem_limit_bytes=32 * 1024 * 1024),
            cost_estimate=pl.CostEstimate(
                flops=0, transcendentals=0,
                bytes_accessed=2 * n_elems * itemsize),
        )(x)

    rows, cols, tile_rows = layout
    x2d = x.reshape(rows, cols)

    # pl.cdiv grid: a non-dividing tail row-tile is masked by Pallas — far
    # cheaper than the old pad + slice (two extra full-array HBM passes).
    grid = (pl.cdiv(rows, tile_rows),)

    out2d = pl.pallas_call(
        _identity_copy_kernel,
        out_shape=jax.ShapeDtypeStruct((rows, cols), dtype),
        grid=grid,
        in_specs=[pl.BlockSpec((tile_rows, cols), lambda i: (i, 0))],
        out_specs=pl.BlockSpec((tile_rows, cols), lambda i: (i, 0)),
        compiler_params=pltpu.CompilerParams(
            # "parallel" lets the row-tile loop shard across v7x's 2 TCs;
            # neutral on single-TC v5e/v6e, so safe everywhere.
            dimension_semantics=("parallel",),
            vmem_limit_bytes=32 * 1024 * 1024,
        ),
        cost_estimate=pl.CostEstimate(
            flops=0, transcendentals=0,
            bytes_accessed=2 * n_elems * itemsize),
    )(x2d)

    return out2d.reshape(orig_shape)


if __name__ == "__main__":
    key = jax.random.PRNGKey(0)
    # Small NCHW input consistent with a conv-style module: batch=2, C=4, H=W=16.
    x = jax.random.normal(key, (2, 4, 16, 16), dtype=jnp.float32)

    # The real optimization: identity forward returns the input untouched.
    y_fast = convnet_forward(x)
    assert y_fast is x

    # Explicit Pallas pass-through (run the kernel once to validate it).
    forward = jax.jit(convnet_forward_pallas)
    y = forward(x)
    jax.block_until_ready(y)

    assert y.shape == x.shape
    assert y.dtype == x.dtype
    assert bool(jnp.all(y == x))

    print("KERNEL_OK")
</pallas_src>

<mosaic_0001>
module attributes {stable_mosaic.version = 11 : i64} {
  func.func @_identity_copy_kernel(%arg0: i32, %arg1: memref<8x256xf32, #tpu.memory_space<vmem>>, %arg2: memref<8x256xf32, #tpu.memory_space<vmem>>) attributes {dimension_semantics = [#tpu.dimension_semantics<parallel>], iteration_bounds = array<i64: 1>, scalar_prefetch = 0 : i64, scratch_operands = 0 : i64, tpu.core_type = #tpu.core_type<tc>, window_params = [{transform_indices = @transform_0, window_bounds = array<i64: 8, 256>}, {transform_indices = @transform_1, window_bounds = array<i64: 8, 256>}]} {
    %c0 = arith.constant 0 : index
    %c0_0 = arith.constant 0 : index
    %0 = vector.load %arg1[%c0, %c0_0] : memref<8x256xf32, #tpu.memory_space<vmem>>, vector<8x256xf32>
    %c0_1 = arith.constant 0 : index
    %c0_2 = arith.constant 0 : index
    %1 = vector.load %arg2[%c0_1, %c0_2] : memref<8x256xf32, #tpu.memory_space<vmem>>, vector<8x256xf32>
    tpu.vector_store %arg2[%c0_1, %c0_2], %0 {strides = array<i32>} : memref<8x256xf32, #tpu.memory_space<vmem>>, vector<8x256xf32>,
    return
  }
  func.func @transform_0(%arg0: i32) -> (i32, i32) {
    %c0_i32 = arith.constant 0 : i32
    %c0_i32_0 = arith.constant 0 : i32
    return %arg0, %c0_i32 : i32, i32
  }
  func.func @transform_1(%arg0: i32) -> (i32, i32) {
    %c0_i32 = arith.constant 0 : i32
    %c0_i32_0 = arith.constant 0 : i32
    return %arg0, %c0_i32 : i32, i32
  }
}

</mosaic_0001>

<bundles_post_ra>
// kernel: convnet_forward_pallas.1
= control target key start
LH: loop header
LB: loop body
LE: loop exit
PB: predicated region body
PF: predicated region fallthrough
CT: control target
= control target key end

     0   :  { %s38_s0 = inlined_call_operand.vmem [shape: f32[8,256], index: 0, kind: input, shape index: {}]   ;;  %s39_s1 = inlined_call_operand.vmem [shape: f32[8,256], index: 1, kind: output, shape index: {}]  }
   0x1   :  { %v8_v0 = vld [vmem:[%s38_s0] sm:$0xff]  ;;  %v9_v1 = vld [vmem:[%s38_s0 + $0x8] sm:$0xff] }
   0x2   :  { %10 = vst [vmem:[%s39_s1] sm:$0xff] %v8_v0 }
   0x3   :  { %11 = vst [vmem:[%s39_s1 + $0x8] sm:$0xff] %v9_v1 }

</bundles_post_ra>
